<compile_context>
chip_gen: v5e
topology: v5e:2x2
jax: 0.10.0
libtpu: 0.0.40
codegen_flags: <defaults>
</compile_context>

<pallas_src>
import functools
import math

import jax
import jax.numpy as jnp
from jax.experimental import pallas as pl
from jax.experimental.pallas import tpu as pltpu

LANE = 128
SUBLANE = 8
CHUNK = SUBLANE * LANE              # 1024: kernel-prefix alignment granularity
MAX_ROW_TILE = 8192                 # 4 MiB per f32 input per pipeline buffer
VMEM_LIMIT_BYTES = 32 * 1024 * 1024  # covers 2 inputs x 2 buffers x 4 MiB + outputs


def _smooth_l1_kernel(pred_ref, target_ref, sum_ref, cnt_ref, *,
                      row_tile, rows_valid, needs_mask):
    i = pl.program_id(0)

    @pl.when(i == 0)
    def _init():
        sum_ref[...] = jnp.zeros_like(sum_ref)
        cnt_ref[...] = jnp.zeros_like(cnt_ref)

    # Cast per-tile in VMEM (inputs arrive in their native dtype).
    p = pred_ref[...].astype(jnp.float32)
    t = target_ref[...].astype(jnp.float32)

    valid = t < 255.0                         # valid_mask = target < 255
    if needs_mask:
        # Only compiled in when the last block is partial (rows % row_tile != 0);
        # the common aligned case pays zero extra VALU work per element.
        row_idx = i * row_tile + jax.lax.broadcasted_iota(
            jnp.int32, (row_tile, LANE), 0)
        valid = valid & (row_idx < rows_valid)

    d = p - t
    ad = jnp.abs(d)
    # F.smooth_l1_loss, beta=1.0: 0.5*d^2 if |d| < 1 else |d| - 0.5
    elem = jnp.where(ad < 1.0, 0.5 * d * d, ad - 0.5)
    # Select (not multiply) so garbage/NaN in masked-out or out-of-bounds
    # elements can never poison the sum.
    masked = jnp.where(valid, elem, 0.0)

    # Pure vreg adds into the resident (8,128) output accumulators; the single
    # cross-lane reduction happens in the wrapper.
    sum_ref[...] += masked.reshape(row_tile // SUBLANE, SUBLANE, LANE).sum(axis=0)
    cnt_ref[...] += valid.astype(jnp.float32).reshape(
        row_tile // SUBLANE, SUBLANE, LANE).sum(axis=0)


def _tail_partials(p_tail, t_tail):
    """Plain-jnp (sum, count) for the <CHUNK-element tail."""
    p = p_tail.astype(jnp.float32)
    t = t_tail.astype(jnp.float32)
    valid = t < 255.0
    d = p - t
    ad = jnp.abs(d)
    elem = jnp.where(ad < 1.0, 0.5 * d * d, ad - 0.5)
    return (jnp.sum(jnp.where(valid, elem, 0.0)),
            jnp.sum(valid.astype(jnp.float32)))


@functools.partial(jax.jit, static_argnames=("loss_weight", "max_row_tile"))
def l1_loss_pallas(pred, target, loss_weight=1.0, max_row_tile=MAX_ROW_TILE):
    """Equivalent of L1Loss.forward(pred, target) with reduction='mean',
    weight=None, avg_factor=None."""
    # TODO(synk): `weight` / `avg_factor` / reduction='sum'|'none' act on the
    # already-scalar inner smooth_l1 mean in the reference; only the default
    # (None, None, 'mean') path is implemented here.
    assert pred.shape == target.shape
    total = math.prod(pred.shape)
    assert total > 0

    p = pred.reshape(-1)          # free (contiguous), native dtype
    t = target.reshape(-1)

    main = (total // CHUNK) * CHUNK        # kernel handles the aligned prefix
    s = jnp.float32(0.0)
    c = jnp.float32(0.0)

    if main:
        rows = main // LANE                # multiple of 8
        row_tile = min(max_row_tile, rows)  # multiple of 8
        nb = -(-rows // row_tile)
        needs_mask = (rows % row_tile) != 0

        # Only slice when the size is ragged; the aligned common case passes
        # the full buffers straight through (no extra HBM traffic).
        p2 = (p if main == total else p[:main]).reshape(rows, LANE)
        t2 = (t if main == total else t[:main]).reshape(rows, LANE)

        kernel = functools.partial(
            _smooth_l1_kernel, row_tile=row_tile, rows_valid=rows,
            needs_mask=needs_mask)

        sums, cnts = pl.pallas_call(
            kernel,
            out_shape=(jax.ShapeDtypeStruct((SUBLANE, LANE), jnp.float32),
                       jax.ShapeDtypeStruct((SUBLANE, LANE), jnp.float32)),
            grid_spec=pltpu.PrefetchScalarGridSpec(
                num_scalar_prefetch=0,
                grid=(nb,),
                in_specs=[
                    pl.BlockSpec((row_tile, LANE), lambda i: (i, 0)),
                    pl.BlockSpec((row_tile, LANE), lambda i: (i, 0)),
                ],
                out_specs=[
                    pl.BlockSpec((SUBLANE, LANE), lambda i: (0, 0)),
                    pl.BlockSpec((SUBLANE, LANE), lambda i: (0, 0)),
                ],
            ),
            compiler_params=pltpu.CompilerParams(
                dimension_semantics=("arbitrary",),
                vmem_limit_bytes=VMEM_LIMIT_BYTES),
        )(p2, t2)
        s = s + jnp.sum(sums)
        c = c + jnp.sum(cnts)

    if main < total:
        # <1024-element remainder: trivial fused XLA reduce in the wrapper.
        ts, tc = _tail_partials(p[main:], t[main:])
        s = s + ts
        c = c + tc

    # If no valid elements, the PyTorch path degenerates to smooth_l1(pred, pred) == 0.
    loss = jnp.where(c > 0.0, s / jnp.maximum(c, 1.0), 0.0)
    return (loss_weight * loss).astype(jnp.float32)


def _jax_ref(pred, target, loss_weight=1.0):
    d = pred.astype(jnp.float32) - target.astype(jnp.float32)
    ad = jnp.abs(d)
    elem = jnp.where(ad < 1.0, 0.5 * d * d, ad - 0.5)
    mask = target.astype(jnp.float32) < 255.0
    return loss_weight * jnp.sum(jnp.where(mask, elem, 0.0)) / jnp.maximum(
        jnp.sum(mask), 1)


def _check(name, got, want):
    assert jnp.allclose(got, want, rtol=1e-5, atol=1e-6), (name, got, want)


if __name__ == "__main__":
    key = jax.random.PRNGKey(0)
    k1, k2, k3, k4, k5, k6, k7 = jax.random.split(key, 7)

    # 1) NCHW, aligned numel (2048): single-block kernel path, no mask, no tail.
    shape = (2, 4, 16, 16)
    pred = jax.random.normal(k1, shape, dtype=jnp.float32)
    target = jax.random.normal(k2, shape, dtype=jnp.float32) * 2.0
    invalid = jax.random.bernoulli(k3, p=0.1, shape=shape)
    target = jnp.where(invalid, jnp.float32(255.0), target)
    loss = l1_loss_pallas(pred, target)
    jax.block_until_ready(loss)
    _check("aligned", loss, _jax_ref(pred, target))

    # loss_weight scaling
    loss_w = l1_loss_pallas(pred, target, loss_weight=2.0)
    jax.block_until_ready(loss_w)
    _check("loss_weight", loss_w, _jax_ref(pred, target, 2.0))

    # 2) ragged numel (1155): kernel prefix (1024) + jnp tail (131).
    shape2 = (3, 5, 7, 11)
    pred2 = jax.random.normal(k4, shape2, dtype=jnp.float32)
    target2 = jax.random.normal(k5, shape2, dtype=jnp.float32) * 2.0
    loss2 = l1_loss_pallas(pred2, target2)
    jax.block_until_ready(loss2)
    _check("ragged", loss2, _jax_ref(pred2, target2))

    # 3) multi-block grid with a partial last block (forced small row tile):
    #    numel=3125 -> 24 rows prefix, row_tile=16, nb=2, masked last block + tail.
    shape3 = (5, 5, 5, 5, 5)
    pred3 = jax.random.normal(k6, shape3, dtype=jnp.float32)
    target3 = jax.random.normal(k7, shape3, dtype=jnp.float32) * 2.0
    loss3 = l1_loss_pallas(pred3, target3, max_row_tile=16)
    jax.block_until_ready(loss3)
    _check("partial_block", loss3, _jax_ref(pred3, target3))

    # 4) all-invalid target -> loss must be exactly 0 (reference degenerates to
    #    smooth_l1(pred, pred) == 0).
    target_inv = jnp.full(shape, 255.0, dtype=jnp.float32)
    loss4 = l1_loss_pallas(pred, target_inv)
    jax.block_until_ready(loss4)
    _check("all_invalid", loss4, jnp.float32(0.0))

    print("KERNEL_OK")
</pallas_src>

<mosaic_0001>
module attributes {stable_mosaic.version = 11 : i64} {
  func.func @_smooth_l1_kernel(%arg0: i32, %arg1: memref<16x128xf32, #tpu.memory_space<vmem>>, %arg2: memref<16x128xf32, #tpu.memory_space<vmem>>, %arg3: memref<8x128xf32, #tpu.memory_space<vmem>>, %arg4: memref<8x128xf32, #tpu.memory_space<vmem>>) attributes {dimension_semantics = [#tpu.dimension_semantics<arbitrary>], iteration_bounds = array<i64: 1>, scalar_prefetch = 0 : i64, scratch_operands = 0 : i64, tpu.core_type = #tpu.core_type<tc>, window_params = [{transform_indices = @transform_0, window_bounds = array<i64: 16, 128>}, {transform_indices = @transform_1, window_bounds = array<i64: 16, 128>}, {pipeline_mode = #tpu.pipeline_mode<synchronous>, transform_indices = @transform_2, window_bounds = array<i64: 8, 128>}, {pipeline_mode = #tpu.pipeline_mode<synchronous>, transform_indices = @transform_3, window_bounds = array<i64: 8, 128>}]} {
    %c0_i32 = arith.constant 0 : i32
    %0 = arith.cmpi eq, %arg0, %c0_i32 : i32
    %1 = arith.extui %0 : i1 to i32
    %c0_i32_0 = arith.constant 0 : i32
    %2 = arith.cmpi ne, %1, %c0_i32_0 : i32
    scf.if %2 {
      %cst_18 = arith.constant 0.000000e+00 : f32
      %31 = vector.broadcast %cst_18 : f32 to vector<8x128xf32>
      %c0_19 = arith.constant 0 : index
      %c0_20 = arith.constant 0 : index
      %32 = vector.load %arg3[%c0_19, %c0_20] : memref<8x128xf32, #tpu.memory_space<vmem>>, vector<8x128xf32>
      tpu.vector_store %arg3[%c0_19, %c0_20], %31 {strides = array<i32>} : memref<8x128xf32, #tpu.memory_space<vmem>>, vector<8x128xf32>,
      %cst_21 = arith.constant 0.000000e+00 : f32
      %33 = vector.broadcast %cst_21 : f32 to vector<8x128xf32>
      %c0_22 = arith.constant 0 : index
      %c0_23 = arith.constant 0 : index
      %34 = vector.load %arg4[%c0_22, %c0_23] : memref<8x128xf32, #tpu.memory_space<vmem>>, vector<8x128xf32>
      tpu.vector_store %arg4[%c0_22, %c0_23], %33 {strides = array<i32>} : memref<8x128xf32, #tpu.memory_space<vmem>>, vector<8x128xf32>,
    } else {
    }
    %c0 = arith.constant 0 : index
    %c0_1 = arith.constant 0 : index
    %3 = vector.load %arg1[%c0, %c0_1] : memref<16x128xf32, #tpu.memory_space<vmem>>, vector<16x128xf32>
    %c0_2 = arith.constant 0 : index
    %c0_3 = arith.constant 0 : index
    %4 = vector.load %arg2[%c0_2, %c0_3] : memref<16x128xf32, #tpu.memory_space<vmem>>, vector<16x128xf32>
    %cst = arith.constant 2.550000e+02 : f32
    %5 = vector.broadcast %cst : f32 to vector<16x128xf32>
    %6 = arith.cmpf olt, %4, %5 : vector<16x128xf32>
    %7 = arith.subf %3, %4 : vector<16x128xf32>
    %8 = math.absf %7 : vector<16x128xf32>
    %cst_4 = arith.constant 1.000000e+00 : f32
    %9 = vector.broadcast %cst_4 : f32 to vector<16x128xf32>
    %10 = arith.cmpf olt, %8, %9 : vector<16x128xf32>
    %cst_5 = arith.constant 5.000000e-01 : f32
    %11 = vector.broadcast %cst_5 : f32 to vector<16x128xf32>
    %12 = arith.mulf %11, %7 : vector<16x128xf32>
    %13 = arith.mulf %12, %7 : vector<16x128xf32>
    %cst_6 = arith.constant 5.000000e-01 : f32
    %14 = vector.broadcast %cst_6 : f32 to vector<16x128xf32>
    %15 = arith.subf %8, %14 : vector<16x128xf32>
    %16 = arith.select %10, %13, %15 : vector<16x128xi1>, vector<16x128xf32>
    %cst_7 = arith.constant 0.000000e+00 : f32
    %17 = vector.broadcast %cst_7 : f32 to vector<16x128xf32>
    %18 = arith.select %6, %16, %17 : vector<16x128xi1>, vector<16x128xf32>
    %c0_8 = arith.constant 0 : index
    %c0_9 = arith.constant 0 : index
    %19 = vector.load %arg3[%c0_8, %c0_9] : memref<8x128xf32, #tpu.memory_space<vmem>>, vector<8x128xf32>
    %20 = vector.shape_cast %18 : vector<16x128xf32> to vector<2x8x128xf32>
    %cst_10 = arith.constant dense<0.000000e+00> : vector<8x128xf32>
    %21 = vector.multi_reduction <add>, %20, %cst_10 [0] : vector<2x8x128xf32> to vector<8x128xf32>
    %22 = arith.addf %19, %21 : vector<8x128xf32>
    %c0_11 = arith.constant 0 : index
    %c0_12 = arith.constant 0 : index
    %23 = vector.load %arg3[%c0_11, %c0_12] : memref<8x128xf32, #tpu.memory_space<vmem>>, vector<8x128xf32>
    tpu.vector_store %arg3[%c0_11, %c0_12], %22 {strides = array<i32>} : memref<8x128xf32, #tpu.memory_space<vmem>>, vector<8x128xf32>,
    %c0_13 = arith.constant 0 : index
    %c0_14 = arith.constant 0 : index
    %24 = vector.load %arg4[%c0_13, %c0_14] : memref<8x128xf32, #tpu.memory_space<vmem>>, vector<8x128xf32>
    %25 = arith.extui %6 : vector<16x128xi1> to vector<16x128xi32>
    %26 = arith.sitofp %25 : vector<16x128xi32> to vector<16x128xf32>
    %27 = vector.shape_cast %26 : vector<16x128xf32> to vector<2x8x128xf32>
    %cst_15 = arith.constant dense<0.000000e+00> : vector<8x128xf32>
    %28 = vector.multi_reduction <add>, %27, %cst_15 [0] : vector<2x8x128xf32> to vector<8x128xf32>
    %29 = arith.addf %24, %28 : vector<8x128xf32>
    %c0_16 = arith.constant 0 : index
    %c0_17 = arith.constant 0 : index
    %30 = vector.load %arg4[%c0_16, %c0_17] : memref<8x128xf32, #tpu.memory_space<vmem>>, vector<8x128xf32>
    tpu.vector_store %arg4[%c0_16, %c0_17], %29 {strides = array<i32>} : memref<8x128xf32, #tpu.memory_space<vmem>>, vector<8x128xf32>,
    return
  }
  func.func @transform_0(%arg0: i32) -> (i32, i32) {
    %c0_i32 = arith.constant 0 : i32
    %c0_i32_0 = arith.constant 0 : i32
    return %arg0, %c0_i32 : i32, i32
  }
  func.func @transform_1(%arg0: i32) -> (i32, i32) {
    %c0_i32 = arith.constant 0 : i32
    %c0_i32_0 = arith.constant 0 : i32
    return %arg0, %c0_i32 : i32, i32
  }
  func.func @transform_2(%arg0: i32) -> (i32, i32) {
    %c0_i32 = arith.constant 0 : i32
    %c0_i32_0 = arith.constant 0 : i32
    %c0_i32_1 = arith.constant 0 : i32
    return %c0_i32, %c0_i32_0 : i32, i32
  }
  func.func @transform_3(%arg0: i32) -> (i32, i32) {
    %c0_i32 = arith.constant 0 : i32
    %c0_i32_0 = arith.constant 0 : i32
    %c0_i32_1 = arith.constant 0 : i32
    return %c0_i32, %c0_i32_0 : i32, i32
  }
}

</mosaic_0001>

<bundles_post_ra>
// kernel: l1_loss_pallas.1
= control target key start
LH: loop header
LB: loop body
LE: loop exit
PB: predicated region body
PF: predicated region fallthrough
CT: control target
= control target key end

     0   :  { %v66_v6 = vmov 0.0   ;;  %s109_s0 = inlined_call_operand.vmem [shape: f32[16,128], index: 0, kind: input, shape index: {}]   ;;  %s110_s1 = inlined_call_operand.vmem [shape: f32[16,128], index: 1, kind: input, shape index: {}]   ;;  %s111_s3 = inlined_call_operand.vmem [shape: f32[8,128], index: 3, kind: output, shape index: {1}]   ;;  %s112_s2 = inlined_call_operand.vmem [shape: f32[8,128], index: 2, kind: output, shape index: {0}]  }
   0x1   :  { %v19_v0 = vld [vmem:[%s109_s0] sm:$0xff]  ;;  %v20_v1 = vld [vmem:[%s109_s0 + $0x8] sm:$0xff] }
   0x2   :  { %v21_v2 = vld [vmem:[%s110_s1] sm:$0xff]  ;;  %v22_v3 = vld [vmem:[%s110_s1 + $0x8] sm:$0xff] }
   0x3   :  { %vm23_vm0 = vcmp.lt.f32.partialorder %v21_v2, 255.0  ;;  %v25_v4 = vsub.f32 %v19_v0, %v21_v2  ;;  %vm24_vm1 = vcmp.lt.f32.partialorder %v22_v3, 255.0  ;;  %v26_v5 = vsub.f32 %v20_v1, %v22_v3 }
   0x4   :  { %v63_v7 = vsel %vm23_vm0, 1.0, %v66_v6  ;;  %v64_v10 = vsel %vm24_vm1, 1.0, %v66_v6 }
   0x5   :  { %v27_v8 = vand.u32 2147483647, %v25_v4  ;;  %v31_v9 = vmul.f32 0.5, %v25_v4  ;;  %v28_v11 = vand.u32 2147483647, %v26_v5  ;;  %v32_v12 = vmul.f32 0.5, %v26_v5 }
   0x6   :  { %v50_v13 = vadd.f32 %v64_v10, %v63_v7 }
   0x7   :  { %vm29_vm2 = vcmp.lt.f32.partialorder %v27_v8, 1.0  ;;  %v33_v14 = vmul.f32 %v31_v9, %v25_v4  ;;  %v61_v15 = vadd.f32 -0.5, %v27_v8  ;;  %vm30_vm3 = vcmp.lt.f32.partialorder %v28_v11, 1.0 }
   0x8   :  { %v34_v16 = vmul.f32 %v32_v12, %v26_v5  ;;  %v62_v17 = vadd.f32 -0.5, %v28_v11  ;;  %52 = vst [vmem:[%s111_s3] sm:$0xff] %v50_v13 }
   0x9   :  { %v37_v18 = vsel %vm29_vm2, %v33_v14, %v61_v15 }
   0xa   :  { %v38_v19 = vsel %vm30_vm3, %v34_v16, %v62_v17  ;;  %v39_v20 = vsel %vm23_vm0, %v37_v18, 0.0 }
   0xb   :  { %v40_v21 = vsel %vm24_vm1, %v38_v19, 0.0 }
   0xc   :  { %v42_v22 = vadd.f32 %v40_v21, %v39_v20 }
   0xe   :  { %44 = vst [vmem:[%s112_s2] sm:$0xff] %v42_v22 }

</bundles_post_ra>
